<compile_context>
chip_gen: v6e
topology: v6e:2x2x1
jax: 0.10.0
libtpu: 0.0.40
codegen_flags: <defaults>
</compile_context>

<pallas_src>
import jax
import jax.numpy as jnp
from jax.experimental import pallas as pl
from jax.experimental.pallas import tpu as pltpu


def _round_up(x, m):
    return ((x + m - 1) // m) * m


def _vmem_capacity_bytes():
    """Physical VMEM per core; conservative (v7x) fallback if query fails."""
    try:
        info = pltpu.get_tpu_info()
        cap = getattr(info, "vmem_capacity_bytes", None)
        if cap:
            return int(cap)
    except Exception:
        pass
    return 64 << 20


def _vmem_estimate(tm, tk, dim, itemsize):
    """Bytes of VMEM the pipeline + kernel body need for one grid step."""
    return (
        2 * tm * dim * itemsize      # x tile (double-buffered)
        + 2 * dim * tk * itemsize    # W_in slab (double-buffered)
        + 2 * tk * 4                 # b_in slab, f32 (double-buffered)
        + 2 * tk * dim * itemsize    # W_out^T slab (double-buffered)
        + 2 * dim * 4                # b_out, f32 (double-buffered)
        + 2 * tm * dim * itemsize    # output tile (double-buffered)
        + tm * dim * 4               # f32 accumulator scratch
        + tm * tk * 4                # relu^2 intermediate h (f32)
        + tm * tk * itemsize         # h cast copy fed to the second dot
    )


def _ff_kernel(x_ref, w1_ref, b1_ref, w2_ref, b2_ref, o_ref, acc_ref):
    # x_ref : (tm, dim)    VMEM, compute dtype
    # w1_ref: (dim, tk)    VMEM, compute dtype (k-th slab of W_in)
    # b1_ref: (1, tk)      VMEM, f32
    # w2_ref: (tk, dim)    VMEM, compute dtype (k-th slab of W_out^T)
    # b2_ref: (1, dim)     VMEM, f32
    # o_ref : (tm, dim)    VMEM, output dtype
    # acc_ref: (tm, dim)   VMEM f32 scratch, carried across the k axis
    k = pl.program_id(1)

    @pl.when(k == 0)
    def _():
        acc_ref[...] = jnp.zeros_like(acc_ref)

    # fused relu-squared on this inner-dim slab; f32 accumulate on the MXU.
    h = jnp.dot(x_ref[...], w1_ref[...], preferred_element_type=jnp.float32)
    h = h + b1_ref[...]                 # bias already f32
    h = jnp.maximum(h, 0.0)
    h = h * h                           # relu^2 stays in f32

    # TODO(synk): dropout p=0.0 in the reference config is the identity; mask
    # h with pltpu.prng_random_bits if a nonzero rate were ever required.

    # partial output projection for this slab (native-dtype MXU dot).
    partial = jnp.dot(h.astype(w2_ref.dtype), w2_ref[...],
                      preferred_element_type=jnp.float32)

    last = k == pl.num_programs(1) - 1

    @pl.when(jnp.logical_not(last))
    def _():
        acc_ref[...] += partial

    @pl.when(last)
    def _():
        # Fold the last partial + bias directly into the output write: saves
        # one (tm, dim) f32 store+load of the accumulator per row tile.
        o_ref[...] = (acc_ref[...] + partial + b2_ref[...]).astype(o_ref.dtype)


def prepare_ff_params(w_in, b_in, w_out, b_out, *, compute_dtype=None, tk=None):
    """One-time weight prep (transpose / pad / cast) kept OFF the hot path.

    w_in: (dim, inner). b_in: (inner,). w_out: (dim, inner) [nn.Linear layout].
    b_out: (dim,). compute_dtype: e.g. jnp.bfloat16 to force the fast MXU path.
    """
    dim, inner = w_in.shape
    compute_dtype = jnp.dtype(compute_dtype or w_in.dtype)
    itemsize = compute_dtype.itemsize

    if tk is None:
        tk = min(512, _round_up(inner, 128))
        if dim >= 8192:                 # keep weight slabs small for huge dim
            tk = min(tk, 256)
        tk = max(128, _round_up(tk, 128))
    inner_pad = _round_up(inner, tk)

    w1 = w_in.astype(compute_dtype)
    w2t = w_out.T.astype(compute_dtype)          # (inner, dim), transposed once
    b1 = b_in.astype(jnp.float32)
    b2 = b_out.astype(jnp.float32)
    if inner_pad != inner:
        # Inner-dim zero padding is mathematically inert: relu(x@0+0)^2 = 0
        # and zero rows of W_out^T contribute 0 to the accumulator.
        pad = inner_pad - inner
        w1 = jnp.pad(w1, ((0, 0), (0, pad)))
        b1 = jnp.pad(b1, ((0, pad),))
        w2t = jnp.pad(w2t, ((0, pad), (0, 0)))

    return {
        "w1": w1,
        "b1": b1.reshape(1, inner_pad),
        "w2t": w2t,
        "b2": b2.reshape(1, dim),
        "dim": dim,
        "inner": inner,
        "inner_pad": inner_pad,
        "tk": tk,
        "compute_dtype": compute_dtype,
    }


def feed_forward(x, params, *, tm_max=1024):
    """x: (B, S, dim) -> (B, S, dim)."""
    B, S, dim = x.shape
    assert dim == params["dim"]
    tk = params["tk"]
    inner_pad = params["inner_pad"]
    cdt = params["compute_dtype"]
    itemsize = cdt.itemsize
    M = B * S

    x2d = x.reshape(M, dim)
    if x2d.dtype != cdt:
        x2d = x2d.astype(cdt)

    # --- tile selection, driven by the actual VMEM capacity ----------------
    sub = 8 if itemsize >= 4 else (16 if itemsize == 2 else 32)
    vmem_phys = _vmem_capacity_bytes()
    # ~100 MiB budget on 128 MiB parts (v5e/v6e), ~52 MiB on 64 MiB parts (v7x).
    budget = min(max(vmem_phys - (12 << 20), 24 << 20), 100 << 20)

    tm = max(sub, _round_up(min(tm_max, _round_up(M, sub)), sub))
    while tm > sub and _vmem_estimate(tm, tk, dim, itemsize) > budget:
        tm = (tm - 256) if tm > 256 else max(sub, _round_up(tm // 2, sub))
    if tm > 256 and tm % 256 != 0:
        tm = max(256, (tm // 256) * 256)          # MXU-friendly row tiles
    # Megacore balance: make sure both TensorCores get a row block (v7x).
    if pl.cdiv(M, tm) < 2 and M > sub:
        tm = max(sub, _round_up(pl.cdiv(M, 2), sub))

    m_blocks = pl.cdiv(M, tm)
    grid = (m_blocks, inner_pad // tk)

    vmem_needed = _vmem_estimate(tm, tk, dim, itemsize)
    vmem_limit = int(min(budget, max(vmem_needed + (8 << 20), 32 << 20)))

    w1, b1, w2t, b2 = params["w1"], params["b1"], params["w2t"], params["b2"]

    cost = pl.CostEstimate(
        flops=2 * 2 * M * dim * params["inner"],          # two matmuls
        transcendentals=0,
        bytes_accessed=int(
            x2d.size * itemsize                           # activations in
            + M * dim * jnp.dtype(x.dtype).itemsize       # output
            # weight slabs are re-streamed once per row block:
            + m_blocks * (w1.size * itemsize + w2t.size * itemsize
                          + b1.size * 4 + b2.size * 4)),
    )

    out2d = pl.pallas_call(
        _ff_kernel,
        out_shape=jax.ShapeDtypeStruct((M, dim), x.dtype),
        grid_spec=pltpu.PrefetchScalarGridSpec(
            num_scalar_prefetch=0,
            grid=grid,
            in_specs=[
                pl.BlockSpec((tm, dim), lambda i, k: (i, 0)),   # x rows
                pl.BlockSpec((dim, tk), lambda i, k: (0, k)),   # W_in slab
                pl.BlockSpec((1, tk), lambda i, k: (0, k)),     # b_in slab (f32)
                pl.BlockSpec((tk, dim), lambda i, k: (k, 0)),   # W_out^T slab
                pl.BlockSpec((1, dim), lambda i, k: (0, 0)),    # b_out (f32)
            ],
            out_specs=pl.BlockSpec((tm, dim), lambda i, k: (i, 0)),
            scratch_shapes=[pltpu.VMEM((tm, dim), jnp.float32)],
        ),
        compiler_params=pltpu.CompilerParams(
            dimension_semantics=("parallel", "arbitrary"),
            vmem_limit_bytes=vmem_limit,
        ),
        cost_estimate=cost,
    )(x2d, w1, b1, w2t, b2)

    return out2d.reshape(B, S, dim)


if __name__ == "__main__":
    # Small deterministic config consistent with the module:
    #   dim=32, mult=4 -> inner_dim=128; x: (batch=2, seq=8, dim=32)
    dim, mult = 32, 4
    inner = dim * mult
    B, S = 2, 8

    key = jax.random.PRNGKey(0)
    kx, kw1, kb1, kw2, kb2 = jax.random.split(key, 5)

    x = jax.random.normal(kx, (B, S, dim), dtype=jnp.float32)
    # proj_in_weight ~ randn(dim, inner_dim), proj_in_bias ~ randn(inner_dim)
    w_in = jax.random.normal(kw1, (dim, inner), dtype=jnp.float32)
    b_in = jax.random.normal(kb1, (inner,), dtype=jnp.float32)
    # nn.Linear(inner_dim, dim): weight (dim, inner_dim), bias (dim,)
    bound = 1.0 / (inner ** 0.5)
    w_out = jax.random.uniform(kw2, (dim, inner), jnp.float32, -bound, bound)
    b_out = jax.random.uniform(kb2, (dim,), jnp.float32, -bound, bound)

    # Weight prep (transpose / pad / f32 biases) happens once, off the hot path.
    params = prepare_ff_params(w_in, b_in, w_out, b_out,
                               compute_dtype=jnp.float32)

    out = feed_forward(x, params)
    out = jax.block_until_ready(out)

    # Pure-JAX reference check of the same math.
    h_ref = jnp.maximum(x.reshape(-1, dim) @ w_in + b_in, 0.0) ** 2
    ref = (h_ref @ w_out.T + b_out).reshape(B, S, dim)
    assert jnp.allclose(out, ref, atol=1e-4, rtol=1e-4), "mismatch vs reference"

    print("KERNEL_OK")
</pallas_src>

<mosaic_0001>
module attributes {stable_mosaic.version = 11 : i64} {
  func.func @_ff_kernel(%arg0: i32, %arg1: i32, %arg2: memref<8x32xf32, #tpu.memory_space<vmem>>, %arg3: memref<32x128xf32, #tpu.memory_space<vmem>>, %arg4: memref<1x128xf32, #tpu.memory_space<vmem>>, %arg5: memref<128x32xf32, #tpu.memory_space<vmem>>, %arg6: memref<1x32xf32, #tpu.memory_space<vmem>>, %arg7: memref<8x32xf32, #tpu.memory_space<vmem>>, %arg8: memref<8x32xf32, #tpu.memory_space<vmem>>) attributes {dimension_semantics = [#tpu.dimension_semantics<parallel>, #tpu.dimension_semantics<arbitrary>], iteration_bounds = array<i64: 2, 1>, scalar_prefetch = 0 : i64, scratch_operands = 1 : i64, tpu.core_type = #tpu.core_type<tc>, window_params = [{transform_indices = @transform_0, window_bounds = array<i64: 8, 32>}, {transform_indices = @transform_1, window_bounds = array<i64: 32, 128>}, {transform_indices = @transform_2, window_bounds = array<i64: 1, 128>}, {transform_indices = @transform_3, window_bounds = array<i64: 128, 32>}, {pipeline_mode = #tpu.pipeline_mode<synchronous>, transform_indices = @transform_4, window_bounds = array<i64: 1, 32>}, {transform_indices = @transform_5, window_bounds = array<i64: 8, 32>}]} {
    %c0_i32 = arith.constant 0 : i32
    %0 = arith.cmpi eq, %arg1, %c0_i32 : i32
    %1 = arith.extui %0 : i1 to i32
    %c0_i32_0 = arith.constant 0 : i32
    %2 = arith.cmpi ne, %1, %c0_i32_0 : i32
    scf.if %2 {
      %cst_13 = arith.constant 0.000000e+00 : f32
      %20 = vector.broadcast %cst_13 : f32 to vector<8x32xf32>
      %c0_14 = arith.constant 0 : index
      %c0_15 = arith.constant 0 : index
      %21 = vector.load %arg8[%c0_14, %c0_15] : memref<8x32xf32, #tpu.memory_space<vmem>>, vector<8x32xf32>
      tpu.vector_store %arg8[%c0_14, %c0_15], %20 {strides = array<i32>} : memref<8x32xf32, #tpu.memory_space<vmem>>, vector<8x32xf32>,
    } else {
    }
    %c0 = arith.constant 0 : index
    %c0_1 = arith.constant 0 : index
    %3 = vector.load %arg2[%c0, %c0_1] : memref<8x32xf32, #tpu.memory_space<vmem>>, vector<8x32xf32>
    %c0_2 = arith.constant 0 : index
    %c0_3 = arith.constant 0 : index
    %4 = vector.load %arg3[%c0_2, %c0_3] : memref<32x128xf32, #tpu.memory_space<vmem>>, vector<32x128xf32>
    %cst = arith.constant dense<0.000000e+00> : vector<8x128xf32>
    %5 = tpu.matmul %3, %4, %cst {dimension_numbers = #tpu.dot_dimension_numbers<[1], [0], [0], [1], [0, 0, 1, 1], [], []>} : vector<8x32xf32>, vector<32x128xf32>, vector<8x128xf32> -> vector<8x128xf32>
    %c0_4 = arith.constant 0 : index
    %c0_5 = arith.constant 0 : index
    %6 = vector.load %arg4[%c0_4, %c0_5] : memref<1x128xf32, #tpu.memory_space<vmem>>, vector<1x128xf32>
    %7 = vector.broadcast %6 : vector<1x128xf32> to vector<8x128xf32>
    %8 = arith.addf %5, %7 : vector<8x128xf32>
    %cst_6 = arith.constant 0.000000e+00 : f32
    %9 = vector.broadcast %cst_6 : f32 to vector<8x128xf32>
    %10 = arith.maximumf %8, %9 : vector<8x128xf32>
    %11 = arith.mulf %10, %10 : vector<8x128xf32>
    %c0_7 = arith.constant 0 : index
    %c0_8 = arith.constant 0 : index
    %12 = vector.load %arg5[%c0_7, %c0_8] : memref<128x32xf32, #tpu.memory_space<vmem>>, vector<128x32xf32>
    %cst_9 = arith.constant dense<0.000000e+00> : vector<8x32xf32>
    %13 = tpu.matmul %11, %12, %cst_9 {dimension_numbers = #tpu.dot_dimension_numbers<[1], [0], [0], [1], [0, 0, 1, 1], [], []>} : vector<8x128xf32>, vector<128x32xf32>, vector<8x32xf32> -> vector<8x32xf32>
    %c0_i32_10 = arith.constant 0 : i32
    %14 = arith.cmpi eq, %arg1, %c0_i32_10 : i32
    %true = arith.constant true
    %15 = arith.xori %14, %true : i1
    %16 = arith.extui %15 : i1 to i32
    %c0_i32_11 = arith.constant 0 : i32
    %17 = arith.cmpi ne, %16, %c0_i32_11 : i32
    scf.if %17 {
      %c0_13 = arith.constant 0 : index
      %c0_14 = arith.constant 0 : index
      %20 = vector.load %arg8[%c0_13, %c0_14] : memref<8x32xf32, #tpu.memory_space<vmem>>, vector<8x32xf32>
      %21 = arith.addf %20, %13 : vector<8x32xf32>
      %c0_15 = arith.constant 0 : index
      %c0_16 = arith.constant 0 : index
      %22 = vector.load %arg8[%c0_15, %c0_16] : memref<8x32xf32, #tpu.memory_space<vmem>>, vector<8x32xf32>
      tpu.vector_store %arg8[%c0_15, %c0_16], %21 {strides = array<i32>} : memref<8x32xf32, #tpu.memory_space<vmem>>, vector<8x32xf32>,
    } else {
    }
    %18 = arith.extui %14 : i1 to i32
    %c0_i32_12 = arith.constant 0 : i32
    %19 = arith.cmpi ne, %18, %c0_i32_12 : i32
    scf.if %19 {
      %c0_13 = arith.constant 0 : index
      %c0_14 = arith.constant 0 : index
      %20 = vector.load %arg8[%c0_13, %c0_14] : memref<8x32xf32, #tpu.memory_space<vmem>>, vector<8x32xf32>
      %21 = arith.addf %20, %13 : vector<8x32xf32>
      %c0_15 = arith.constant 0 : index
      %c0_16 = arith.constant 0 : index
      %22 = vector.load %arg6[%c0_15, %c0_16] : memref<1x32xf32, #tpu.memory_space<vmem>>, vector<1x32xf32>
      %23 = vector.broadcast %22 : vector<1x32xf32> to vector<8x32xf32>
      %24 = arith.addf %21, %23 : vector<8x32xf32>
      %c0_17 = arith.constant 0 : index
      %c0_18 = arith.constant 0 : index
      %25 = vector.load %arg7[%c0_17, %c0_18] : memref<8x32xf32, #tpu.memory_space<vmem>>, vector<8x32xf32>
      tpu.vector_store %arg7[%c0_17, %c0_18], %24 {strides = array<i32>} : memref<8x32xf32, #tpu.memory_space<vmem>>, vector<8x32xf32>,
    } else {
    }
    return
  }
  func.func @transform_0(%arg0: i32, %arg1: i32) -> (i32, i32) {
    %c0_i32 = arith.constant 0 : i32
    %c0_i32_0 = arith.constant 0 : i32
    return %arg0, %c0_i32 : i32, i32
  }
  func.func @transform_1(%arg0: i32, %arg1: i32) -> (i32, i32) {
    %c0_i32 = arith.constant 0 : i32
    %c0_i32_0 = arith.constant 0 : i32
    return %c0_i32, %arg1 : i32, i32
  }
  func.func @transform_2(%arg0: i32, %arg1: i32) -> (i32, i32) {
    %c0_i32 = arith.constant 0 : i32
    %c0_i32_0 = arith.constant 0 : i32
    return %c0_i32, %arg1 : i32, i32
  }
  func.func @transform_3(%arg0: i32, %arg1: i32) -> (i32, i32) {
    %c0_i32 = arith.constant 0 : i32
    %c0_i32_0 = arith.constant 0 : i32
    return %arg1, %c0_i32 : i32, i32
  }
  func.func @transform_4(%arg0: i32, %arg1: i32) -> (i32, i32) {
    %c0_i32 = arith.constant 0 : i32
    %c0_i32_0 = arith.constant 0 : i32
    %c0_i32_1 = arith.constant 0 : i32
    return %c0_i32, %c0_i32_0 : i32, i32
  }
  func.func @transform_5(%arg0: i32, %arg1: i32) -> (i32, i32) {
    %c0_i32 = arith.constant 0 : i32
    %c0_i32_0 = arith.constant 0 : i32
    return %arg0, %c0_i32 : i32, i32
  }
}

</mosaic_0001>

<bundles_post_ra>
// kernel: tpu_custom_call.1
= control target key start
LH: loop header
LB: loop body
LE: loop exit
PB: predicated region body
PF: predicated region fallthrough
CT: control target
= control target key end

     0   :  { %10 = vsyncpa [#allocation4], 0  ;;  %s1055_s0 = inlined_call_operand.vmem [shape: f32[16,32], index: 0, kind: input, shape index: {}]   ;;  %s1056_s1 = inlined_call_operand.vmem [shape: f32[32,128], index: 1, kind: input, shape index: {}]   ;;  %s1057_s2 = inlined_call_operand.vmem [shape: f32[1,128], index: 2, kind: input, shape index: {}]   ;;  %s1058_s3 = inlined_call_operand.vmem [shape: f32[128,32], index: 3, kind: input, shape index: {}]   ;;  %s1059_s4 = inlined_call_operand.vmem [shape: f32[1,32], index: 4, kind: input, shape index: {}]   ;;  %s1060_s5 = inlined_call_operand.hbm [shape: f32[16,32], index: 5, kind: output, shape index: {}]  }
   0x1   :  { %12 = vsyncpa [#allocation4 + $0x1], 0  ;;  %s862_s18 = smov 0   ;;  %s864_s19 = smov 0  }
   0x2   :  { %s866_s20 = smov 0   ;;  %s868_s21 = smov 0  }
   0x3   :  { %s870_s22 = smov 0   ;;  %s872_s23 = smov 0  }
   0x4 LB: > { %s609_s24 = sadd.s32 4294967295, %s827_s23   ;;  %s610_s25 = sadd.s32 4294967294, %s827_s23   ;;  %s827_s23 = sphi %s872_s23, %s18_s23   ;;  %s823_s22 = sphi %s870_s22, %s1067_s22   ;;  %s819_s21 = sphi %s868_s21, %s1066_s21   ;;  %s815_s20 = sphi %s866_s20, %s1065_s20   ;;  %s811_s19 = sphi %s864_s19, %s1064_s19   ;;  %s807_s18 = sphi %s862_s18, %s1063_s18  }
   0x5   : > { %s30_s26 = sadd.s32 1, %s823_s22  ;;  %s162_s27 = sadd.s32 1, %s815_s20 }
   0x6   : > { %p32_p0 = scmp.ge.s32.totalorder %s30_s26, 2  ;;  %p172_p1 = scmp.ne.s32.totalorder %s815_s20, %s811_s19 }
   0x7   : > { %p173_p2 = scmp.eq.s32.totalorder %s609_s24, 1  ;;  %p178_p3 = scmp.ne.s32.totalorder %s811_s19, %s807_s18 }
   0x8   : > { %s1069_s26 = smov (%p32_p0, %s30_s26), 0  ;;  %p179_p5 = scmp.eq.s32.totalorder %s610_s25, 1 }
   0x9   : > { %p902_p4 = por %p173_p2, %p172_p1  ;;  %s159_s29 = ssub.s32 %s823_s22, %s1069_s26 }
   0xa   : > { %p616_p6 = scmp.ge.s32.totalorder %s827_s23, 1  ;;  %p160_p7 = scmp.eq.s32.totalorder %s159_s29, 0 }
   0xb   : > { %p909_p8 = por %p179_p5, %p178_p3  ;;  %p229_p9 = scmp.lt.s32.totalorder %s827_s23, 3 }
   0xc   : > { %s915_s6 = scalar_select %p160_p7, %s815_s20, %s162_s27  }
   0xd   : > { %p230_p10 = pnand %p616_p6, %p229_p9 }
   0xe   : > { %p268_p11 = scmp.lt.s32.totalorder (!%p230_p10), %s819_s21, 1  ;;  %s265_s9 = sand.u32 (!%p230_p10), 1, %s811_s19  }
   0xf   : > { %233 = sbr.rel (%p230_p10) target bundleno = 438 (0x1b6), region = 40  ;;  %s487_s25 = scalar_lea.sflag (!%p230_p10), [#allocation4], %s265_s9 }
  0x10   : > { %s831_s29 = smov (!%p230_p10), [#allocation3]  }
  0x14   : > { %v295_v0 = vld [vmem:[%s1056_s1 + $0x18] sm:$0xff]  ;;  %v829_v1 = vmov 0.0   ;;  %v294_v2 = vld [vmem:[%s1056_s1 + $0x10] sm:$0xff]  ;;  %vm830_vm0 = vmmov 0   ;;  %vm289_vm1 = vcmask 261120   ;;  %s269_s13 = scalar_select %p268_p11, %s819_s21, 1 }
  0x15   : > { %648 = vmatprep.subr.mxu0 %v829_v1  ;;  %656 = vmatprep.mubr.msk.f32.mxu0 %vm830_vm0, %v829_v1  ;;  %v394_v3 = vld [vmem:[%s1058_s3 + $0x78] sm:$0xff]  ;;  %290 = vst.msk [vmem:[#allocation2] sm:$0xff] %vm289_vm1, %v829_v1  ;;  %v393_v4 = vld [vmem:[%s1058_s3 + $0x70] sm:$0xff]  ;;  %v293_v5 = vld [vmem:[%s1056_s1 + $0x8] sm:$0xff] }
  0x16   : > { %649 = vmatpush3.msra.mxu0 %v295_v0  ;;  %659 = vmatprep.subr.mxu1 %v829_v1  ;;  %s618_s24 = sshll.u32 %s269_s13, 3  ;;  %v392_v6 = vld [vmem:[%s1058_s3 + $0x68] sm:$0xff]  ;;  %v292_v7 = vld [vmem:[%s1056_s1] sm:$0xff]  ;;  %v390_v10 = vld [vmem:[%s1058_s3 + $0x58] sm:$0xff]  ;;  %s623_s13 = sshll.u32 %s819_s21, 7 }
  0x17   : > { %650 = vmatprep.subr.mxu0 %v829_v1  ;;  %660 = vmatpush3.msra.mxu1 %v394_v3  ;;  %s271_s10 = scalar_lea.vmem %s1055_s0, %s618_s24  ;;  %v391_v9 = vld [vmem:[%s1058_s3 + $0x60] sm:$0xff]  ;;  %v389_v11 = vld [vmem:[%s1058_s3 + $0x50] sm:$0xff]  ;;  %v388_v12 = vld [vmem:[%s1058_s3 + $0x48] sm:$0xff]  ;;  %s498_s24 = scalar_lea.hbm %s1060_s5, %s623_s13 }
  0x18   : > { %651 = vmatpush3.msra.mxu0 %v294_v2  ;;  %661 = vmatprep.subr.mxu1 %v829_v1  ;;  %v291_v8 = vld [vmem:[%s271_s10] sm:$0xff]  ;;  %v386_v14 = vld [vmem:[%s1058_s3 + $0x38] sm:$0xff]  ;;  %v385_v15 = vld [vmem:[%s1058_s3 + $0x30] sm:$0xff]  ;;  %s617_s10 = sshll.u32 %s265_s9, 3  ;;  %s755_s21 = sshll.u32 %s831_s29, 4  ;;  %s756_s21 = int_to_ptr.vmem [resolvable:$false] %s755_s21 }
  0x19   : > { %652 = vmatprep.subr.mxu0 %v829_v1  ;;  %662 = vmatpush3.msra.mxu1 %v393_v4  ;;  %v387_v13 = vld [vmem:[%s1058_s3 + $0x40] sm:$0xff]  ;;  %v384_v16 = vld [vmem:[%s1058_s3 + $0x28] sm:$0xff]  ;;  %v382_v18 = vld [vmem:[%s1058_s3 + $0x18] sm:$0xff]  ;;  %s267_s14 = scalar_lea.vmem [#allocation3], %s617_s10  ;;  %s757_s7 = scalar_lea.vmem %s756_s21, 256 }
  0x1a   : > { %653 = vmatpush3.msra.mxu0 %v293_v5  ;;  %663 = vmatprep.subr.mxu1 %v829_v1  ;;  %v383_v17 = vld [vmem:[%s1058_s3 + $0x20] sm:$0xff]  ;;  %v381_v19 = vld [vmem:[%s1058_s3 + $0x10] sm:$0xff]  ;;  %v380_v20 = vld [vmem:[%s1058_s3 + $0x8] sm:$0xff]  ;;  %s500_s15 = sshll.u32 %s267_s14, 4  ;;  %s501_s15 = int_to_ptr.vmem [resolvable:$true] %s500_s15 }
  0x1b   : > { %654 = vmatprep.subr.mxu0 %v829_v1  ;;  %664 = vmatpush3.msra.mxu1 %v392_v6  ;;  %v379_v21 = vld [vmem:[%s1058_s3] sm:$0xff]  ;;  %s751_s27 = scalar_lea.vmem %s501_s15, 128  ;;  %p758_p1 = scmp.lt.s32.totalorder %s501_s15, %s756_s21 }
  0x1c   : > { %655 = vmatpush3.msra.mxu0 %v292_v7  ;;  %665 = vmatprep.subr.mxu1 %v829_v1  ;;  %v619_v22 = vld [vmem:[%s1057_s2] ss:$0 sm:$0xff]  ;;  %p752_p12 = scmp.ne.s32.totalorder %s501_s15, %s751_s27  ;;  %p759_p2 = scmp.lt.s32.totalorder %s757_s7, %s751_s27 }
  0x1d   : > { %657 = vmatmul.mubr.msk.f32.vlgmr.msra.gmra.mxu0 %vm289_vm1, %v291_v8  ;;  %666 = vmatpush3.msra.mxu1 %v391_v9  ;;  %v475_v28 = vld [vmem:[#allocation2] sm:$0xff] }
  0x1e   : > { %667 = vmatprep.subr.mxu1 %v829_v1  ;;  %691 = vmatprep.mubr.msk.f32.mxu1 %vm830_vm0, %v829_v1  ;;  %v621_v30 = vld [vmem:[%s1059_s4] ss:$0 sm:$0xff]  ;;  %p753_p13 = pnand %p752_p12, %p902_p4  ;;  %p760_p3 = por %p759_p2, %p758_p1 }
  0x1f   : > { %668 = vmatpush3.msra.mxu1 %v390_v10 }
  0x20   : > { %669 = vmatprep.subr.mxu1 %v829_v1  ;;  %p754_p0 = pneg %p753_p13 }
  0x21   : > { %670 = vmatpush3.msra.mxu1 %v389_v11 }
  0x22   : > { %671 = vmatprep.subr.mxu1 %v829_v1  ;;  %p761_p5 = pnand %p760_p3, %p754_p0 }
  0x23   : > { %672 = vmatpush3.msra.mxu1 %v388_v12 }
  0x24   : > { %673 = vmatprep.subr.mxu1 %v829_v1 }
  0x25   : > { %674 = vmatpush3.msra.mxu1 %v387_v13 }
  0x26   : > { %675 = vmatprep.subr.mxu1 %v829_v1 }
  0x27   : > { %676 = vmatpush3.msra.mxu1 %v386_v14 }
  0x28   : > { %677 = vmatprep.subr.mxu1 %v829_v1 }
  0x29   : > { %678 = vmatpush3.msra.mxu1 %v385_v15 }
  0x2a   : > { %679 = vmatprep.subr.mxu1 %v829_v1 }
  0x2b   : > { %680 = vmatpush3.msra.mxu1 %v384_v16 }
  0x2c   : > { %681 = vmatprep.subr.mxu1 %v829_v1 }
  0x2d   : > { %682 = vmatpush3.msra.mxu1 %v383_v17 }
  0x2e   : > { %683 = vmatprep.subr.mxu1 %v829_v1 }
  0x2f   : > { %684 = vmatpush3.msra.mxu1 %v382_v18 }
  0x30   : > { %685 = vmatprep.subr.mxu1 %v829_v1 }
  0x31   : > { %686 = vmatpush3.msra.mxu1 %v381_v19 }
  0x32   : > { %687 = vmatprep.subr.mxu1 %v829_v1 }
  0x33   : > { %688 = vmatpush3.msra.mxu1 %v380_v20 }
  0x34   : > { %689 = vmatprep.subr.mxu1 %v829_v1 }
  0x35   : > { %690 = vmatpush3.msra.mxu1 %v379_v21 }
  0xdd   : > { %v373_v23 = vpop.f32.mrf.mxu0 }
  0xde   : > { %v374_v24 = vadd.f32 %v619_v22, %v373_v23 }
  0xdf   : > { %v658_v25 = vpop.f32.mrf.mxu0 }
  0xe0   : > { %v377_v26 = vmax.f32 %v374_v24, 0.0 }
  0xe2   : > { %v378_v27 = vmul.f32 %v377_v26, %v377_v26 }
  0xe4   : > { %692 = vmatmul.mubr.f32.vlgmr.msra.gmra.mxu1 %v378_v27 }
 0x1a4   : > { %v461_v29 = vpop.f32.mrf.mxu1 }
 0x1a5   : > { %v476_v31 = vadd.f32 %v475_v28, %v461_v29 }
 0x1a6   : > { %v693_v32 = vpop.f32.mrf.mxu1 }
 0x1a7   : > { %v484_v33 = vadd.f32 %v621_v30, %v476_v31 }
 0x1a9   : > { %485 = vst.msk [vmem:[%s267_s14] sm:$0xff] %vm289_vm1, %v484_v33 }
 0x1aa   : > { %764 = shalt.err (!%p761_p5)
}
 0x1ab   : > { %s765_s8 = scalar_lea.hbm %s498_s24, 128  ;;  %s769_s11 = scalar_lea.hbm %s1060_s5, 256 }
 0x1ac   : > { %p766_p6 = scmp.ne.s32.totalorder %s498_s24, %s765_s8  ;;  %p770_p10 = scmp.lt.s32.totalorder %s498_s24, %s1060_s5 }
 0x1ad   : > { %p771_p11 = scmp.lt.s32.totalorder %s769_s11, %s765_s8 }
 0x1ae   : > { %p767_p7 = pnand %p766_p6, %p902_p4 }
 0x1af   : > { %p772_p12 = por %p771_p11, %p770_p10 }
 0x1b0   : > { %p768_p9 = pneg %p767_p7 }
 0x1b2   : > { %p773_p13 = pnand %p772_p12, %p768_p9 }
 0x1b4   : > { %776 = shalt.err (!%p773_p13)
}
 0x1b5   : > { %694 = dma.vmem_to_hbm [thread:$0]  (%p902_p4), %s501_s15, 128, %s498_s24, %s487_s25  }
 0x1b6 PF: > { %p700_p0 = scmp.ge.s32.totalorder %s827_s23, 2  ;;  %s512_s14 = sand.u32 1, %s807_s18  }
 0x1b7   : > { %s513_s16 = scalar_lea.sflag [#allocation4], %s512_s14 }
 0x1b8   : > { %p697_p1 = pnand %p700_p0, %p909_p8 }
 0x1ba   : > { %p698_p2 = pneg %p697_p1 }
 0x1bc   : > { %802 = dma.done.wait (%p698_p2), %s513_s16, 128  }
 0x1bd   : > { %804 = vsyncadd (%p698_p2), %s513_s16, 4294967168  ;;  %s18_s23 = sadd.s32 1, %s827_s23   ;;  %s1063_s18 = smov %s811_s19 }
 0x1be   : > { %p15_p3 = scmp.ge.s32.totalorder %s18_s23, 4   ;;  %s1064_s19 = smov %s815_s20 }
 0x1bf   : > { %s1065_s20 = smov %s915_s6  ;;  %s1066_s21 = smov %s823_s22 }
 0x1c0   : > { %s1067_s22 = smov %s1069_s26  ;;  %17 = sbr.rel (!%p15_p3) target bundleno = 4 (0x4), region = 96 }
 0x1c5   :  { %518 = vsyncpa [#allocation4], 1 }
 0x1c6   :  { %520 = vsyncpa [#allocation4 + $0x1], 1 }

</bundles_post_ra>
